<compile_context>
chip_gen: v6e
topology: v6e:2x2x1
jax: 0.10.0
libtpu: 0.0.40
codegen_flags: <defaults>
</compile_context>

<pallas_src>
import math
import functools

import jax
import jax.numpy as jnp
from jax.experimental import pallas as pl
from jax.experimental.pallas import tpu as pltpu


# ---------------------------------------------------------------------------
# Helpers
# ---------------------------------------------------------------------------
def _layernorm(x, gamma, beta, eps=1e-5):
    # PyTorch nn.LayerNorm: biased variance over last dim, eps inside sqrt.
    mu = jnp.mean(x, axis=-1, keepdims=True)
    var = jnp.mean((x - mu) ** 2, axis=-1, keepdims=True)
    return (x - mu) * jax.lax.rsqrt(var + eps) * gamma + beta


def _default_batch_tile(B):
    # Largest divisor of B that still leaves >= 2 parallel grid steps
    # (feeds both v7x TensorCores) while folding batch rows into M.
    if B < 2:
        return B
    for t in range(B // 2, 0, -1):
        if B % t == 0:
            return t
    return 1


# ---------------------------------------------------------------------------
# Kernel: full encoder stack. grid = (batch_tiles, num_blocks)
# ---------------------------------------------------------------------------
def encoder_stack_kernel(num_heads, btile, S,
                         x_ref,
                         wqkv_ref, bqkv_ref,
                         wo_ref, bo_ref,
                         g1_ref, be1_ref,
                         w1_ref, b1_ref,
                         w2_ref, b2_ref,
                         g2_ref, be2_ref,
                         o_ref,
                         xcur_ref, attn_ref):
    l = pl.program_id(1)

    # Load fresh activations for this batch tile at the first block.
    @pl.when(l == 0)
    def _():
        xcur_ref[...] = x_ref[...]

    x = xcur_ref[...]                     # (btile*S, D) float32
    D = x.shape[-1]
    hd = D // num_heads
    scale = 1.0 / math.sqrt(hd)

    # Hoist biases / LN params (loaded once, reused).
    bqkv = bqkv_ref[0]                    # (1, 3D)
    bo = bo_ref[0]                        # (1, D)
    g1 = g1_ref[0]
    be1 = be1_ref[0]
    b1 = b1_ref[0]
    b2 = b2_ref[0]
    g2 = g2_ref[0]
    be2 = be2_ref[0]

    wqkv = wqkv_ref[0]                    # (D, 3D) bf16
    wo = wo_ref[0]                        # (D, D)  bf16
    w1 = w1_ref[0]                        # (D, H)  bf16
    w2 = w2_ref[0]                        # (H, D)  bf16

    # ---- Fused Q/K/V projection over the whole (btile*S, D) slab ----
    qkv = jnp.dot(x.astype(jnp.bfloat16), wqkv,
                  preferred_element_type=jnp.float32) + bqkv        # (M, 3D)
    q = (qkv[:, :D] * scale).astype(jnp.bfloat16)
    k = qkv[:, D:2 * D].astype(jnp.bfloat16)
    v = qkv[:, 2 * D:].astype(jnp.bfloat16)

    # ---- Attention core: per batch row, per head; accumulate into WO ----
    for b in range(btile):                # static unroll (btile is small)
        r0 = b * S
        acc = jnp.zeros((S, D), jnp.float32)
        for h in range(num_heads):        # static unroll over heads
            c0 = h * hd
            qh = q[r0:r0 + S, c0:c0 + hd]
            kh = k[r0:r0 + S, c0:c0 + hd]
            vh = v[r0:r0 + S, c0:c0 + hd]
            # QK^T without materializing a transpose (contract last dims).
            s = jax.lax.dot_general(qh, kh, (((1,), (1,)), ((), ())),
                                    preferred_element_type=jnp.float32)
            s = s - jnp.max(s, axis=-1, keepdims=True)
            p = jnp.exp(s)
            p = p * pl.reciprocal(jnp.sum(p, axis=-1, keepdims=True),
                                  approx=True)
            oh = jnp.dot(p.astype(jnp.bfloat16), vh,
                         preferred_element_type=jnp.float32)         # (S, hd)
            # Accumulate this head straight into the output projection.
            acc = acc + jnp.dot(oh.astype(jnp.bfloat16), wo[c0:c0 + hd, :],
                                preferred_element_type=jnp.float32)  # (S, D)
        attn_ref[r0:r0 + S, :] = acc

    xa = attn_ref[...] + bo

    # Residual + LayerNorm 1
    x = x + xa
    x = _layernorm(x, g1, be1)

    # ---- Feed-forward: Linear -> Linear -> ReLU (ReLU last, per reference) ----
    h1 = jnp.dot(x.astype(jnp.bfloat16), w1,
                 preferred_element_type=jnp.float32) + b1
    h2 = jnp.dot(h1.astype(jnp.bfloat16), w2,
                 preferred_element_type=jnp.float32) + b2
    xf = jnp.maximum(h2, 0.0)

    # Residual + LayerNorm 2
    x = x + xf
    x = _layernorm(x, g2, be2)

    # Carry activations to the next block (stays in VMEM).
    xcur_ref[...] = x

    @pl.when(l == pl.num_programs(1) - 1)
    def _():
        o_ref[...] = x.astype(o_ref.dtype)


# ---------------------------------------------------------------------------
# Wrapper: one pallas_call for the whole stack
# ---------------------------------------------------------------------------
def encoder_not_clever(x, block_params, num_heads, *, batch_tile=None):
    B, S, D = x.shape
    L = len(block_params)
    H = block_params[0]["w1"].shape[1]

    if batch_tile is None:
        batch_tile = _default_batch_tile(B)
    if B % batch_tile != 0:
        batch_tile = B
    if (batch_tile * S) % 8 != 0 and batch_tile != B:
        batch_tile = B                     # keep block sublane-legal
    n_bt = B // batch_tile
    M = batch_tile * S

    def stack(name):
        return jnp.stack([p[name] for p in block_params], axis=0)

    # Host-side fusion: stack per-block params, fuse Q/K/V weights, cast
    # matmul weights to bf16 (f32 accumulation in-kernel).
    wqkv = jnp.concatenate([stack("wq"), stack("wk"), stack("wv")],
                           axis=2).astype(jnp.bfloat16)     # (L, D, 3D)
    bqkv = jnp.concatenate([stack("bq"), stack("bk"), stack("bv")], axis=2)
    wo = stack("wo").astype(jnp.bfloat16)
    bo = stack("bo")
    g1, be1 = stack("g1"), stack("be1")
    w1 = stack("w1").astype(jnp.bfloat16)
    b1 = stack("b1")
    w2 = stack("w2").astype(jnp.bfloat16)
    b2 = stack("b2")
    g2, be2 = stack("g2"), stack("be2")

    x2 = x.reshape(B * S, D)               # fold batch into the M dimension

    def wspec(shape):
        return pl.BlockSpec((1,) + shape, lambda bt, l: (l, 0, 0))

    in_specs = [
        pl.BlockSpec((M, D), lambda bt, l: (bt, 0)),   # activations
        wspec((D, 3 * D)), wspec((1, 3 * D)),          # wqkv, bqkv
        wspec((D, D)), wspec((1, D)),                  # wo, bo
        wspec((1, D)), wspec((1, D)),                  # g1, be1
        wspec((D, H)), wspec((1, H)),                  # w1, b1
        wspec((H, D)), wspec((1, D)),                  # w2, b2
        wspec((1, D)), wspec((1, D)),                  # g2, be2
    ]

    out = pl.pallas_call(
        functools.partial(encoder_stack_kernel, num_heads, batch_tile, S),
        out_shape=jax.ShapeDtypeStruct((B * S, D), jnp.float32),
        grid_spec=pltpu.PrefetchScalarGridSpec(
            num_scalar_prefetch=0,
            grid=(n_bt, L),
            in_specs=in_specs,
            out_specs=pl.BlockSpec((M, D), lambda bt, l: (bt, 0)),
            scratch_shapes=[
                pltpu.VMEM((M, D), jnp.float32),   # activation carry
                pltpu.VMEM((M, D), jnp.float32),   # attention accumulator
            ],
        ),
        compiler_params=pltpu.CompilerParams(
            dimension_semantics=("parallel", "arbitrary"),
            vmem_limit_bytes=64 * 1024 * 1024,
        ),
    )(x2, wqkv, bqkv, wo, bo, g1, be1, w1, b1, w2, b2, g2, be2)

    return out.reshape(B, S, D)


# ---------------------------------------------------------------------------
# Deterministic parameter init + pure-JAX (f32) reference
# ---------------------------------------------------------------------------
def init_block_params(key, in_dim, hidden_dim):
    ks = jax.random.split(key, 6)
    std = 0.05

    def w(k, shape):
        return jax.random.normal(k, shape, jnp.float32) * std

    return {
        "wq": w(ks[0], (in_dim, in_dim)), "bq": jnp.zeros((1, in_dim), jnp.float32),
        "wk": w(ks[1], (in_dim, in_dim)), "bk": jnp.zeros((1, in_dim), jnp.float32),
        "wv": w(ks[2], (in_dim, in_dim)), "bv": jnp.zeros((1, in_dim), jnp.float32),
        "wo": w(ks[3], (in_dim, in_dim)), "bo": jnp.zeros((1, in_dim), jnp.float32),
        "g1": jnp.ones((1, in_dim), jnp.float32), "be1": jnp.zeros((1, in_dim), jnp.float32),
        "w1": w(ks[4], (in_dim, hidden_dim)), "b1": jnp.zeros((1, hidden_dim), jnp.float32),
        "w2": w(ks[5], (hidden_dim, in_dim)), "b2": jnp.zeros((1, in_dim), jnp.float32),
        "g2": jnp.ones((1, in_dim), jnp.float32), "be2": jnp.zeros((1, in_dim), jnp.float32),
    }


def reference_block(x, p, num_heads):
    B, S, D = x.shape
    hd = D // num_heads
    q = x @ p["wq"] + p["bq"][0]
    k = x @ p["wk"] + p["bk"][0]
    v = x @ p["wv"] + p["bv"][0]
    q = q.reshape(B, S, num_heads, hd).transpose(0, 2, 1, 3)
    k = k.reshape(B, S, num_heads, hd).transpose(0, 2, 1, 3)
    v = v.reshape(B, S, num_heads, hd).transpose(0, 2, 1, 3)
    s = jnp.einsum("bhqd,bhkd->bhqk", q, k) / math.sqrt(hd)
    a = jax.nn.softmax(s, axis=-1)
    o = jnp.einsum("bhqk,bhkd->bhqd", a, v).transpose(0, 2, 1, 3).reshape(B, S, D)
    xa = o @ p["wo"] + p["bo"][0]
    x = x + xa
    x = _layernorm(x, p["g1"][0], p["be1"][0])
    h1 = x @ p["w1"] + p["b1"][0]
    h2 = h1 @ p["w2"] + p["b2"][0]
    xf = jnp.maximum(h2, 0.0)
    x = x + xf
    return _layernorm(x, p["g2"][0], p["be2"][0])


# ---------------------------------------------------------------------------
if __name__ == "__main__":
    B, S, D = 2, 8, 32          # batch, seq, in_dim
    hidden_fw_dim = 64
    num_heads = 4
    num_blocks = 2

    root = jax.random.PRNGKey(0)
    kx, *kb = jax.random.split(root, num_blocks + 1)
    x = jax.random.normal(kx, (B, S, D), jnp.float32)
    block_params = [init_block_params(kb[i], D, hidden_fw_dim)
                    for i in range(num_blocks)]

    out = encoder_not_clever(x, block_params, num_heads)
    out = jax.block_until_ready(out)

    # sanity check against a pure-JAX f32 reference (kernel uses bf16 matmuls
    # + approx reciprocal, so tolerance is loosened accordingly)
    ref = x
    for p in block_params:
        ref = reference_block(ref, p, num_heads)
    assert jnp.allclose(out, ref, atol=3e-2, rtol=3e-2), "mismatch vs reference"

    print("KERNEL_OK")
</pallas_src>

<mosaic_0001>
module attributes {stable_mosaic.version = 11 : i64} {
  func.func @encoder_stack_kernel(%arg0: i32, %arg1: i32, %arg2: memref<8x32xf32, #tpu.memory_space<vmem>>, %arg3: memref<1x32x96xbf16, #tpu.memory_space<vmem>>, %arg4: memref<1x1x96xf32, #tpu.memory_space<vmem>>, %arg5: memref<1x32x32xbf16, #tpu.memory_space<vmem>>, %arg6: memref<1x1x32xf32, #tpu.memory_space<vmem>>, %arg7: memref<1x1x32xf32, #tpu.memory_space<vmem>>, %arg8: memref<1x1x32xf32, #tpu.memory_space<vmem>>, %arg9: memref<1x32x64xbf16, #tpu.memory_space<vmem>>, %arg10: memref<1x1x64xf32, #tpu.memory_space<vmem>>, %arg11: memref<1x64x32xbf16, #tpu.memory_space<vmem>>, %arg12: memref<1x1x32xf32, #tpu.memory_space<vmem>>, %arg13: memref<1x1x32xf32, #tpu.memory_space<vmem>>, %arg14: memref<1x1x32xf32, #tpu.memory_space<vmem>>, %arg15: memref<8x32xf32, #tpu.memory_space<vmem>>, %arg16: memref<8x32xf32, #tpu.memory_space<vmem>>, %arg17: memref<8x32xf32, #tpu.memory_space<vmem>>) attributes {dimension_semantics = [#tpu.dimension_semantics<parallel>, #tpu.dimension_semantics<arbitrary>], iteration_bounds = array<i64: 2, 2>, scalar_prefetch = 0 : i64, scratch_operands = 2 : i64, tpu.core_type = #tpu.core_type<tc>, window_params = [{transform_indices = @transform_0, window_bounds = array<i64: 8, 32>}, {transform_indices = @transform_1, window_bounds = array<i64: 1, 32, 96>}, {transform_indices = @transform_2, window_bounds = array<i64: 1, 1, 96>}, {transform_indices = @transform_3, window_bounds = array<i64: 1, 32, 32>}, {transform_indices = @transform_4, window_bounds = array<i64: 1, 1, 32>}, {transform_indices = @transform_5, window_bounds = array<i64: 1, 1, 32>}, {transform_indices = @transform_6, window_bounds = array<i64: 1, 1, 32>}, {transform_indices = @transform_7, window_bounds = array<i64: 1, 32, 64>}, {transform_indices = @transform_8, window_bounds = array<i64: 1, 1, 64>}, {transform_indices = @transform_9, window_bounds = array<i64: 1, 64, 32>}, {transform_indices = @transform_10, window_bounds = array<i64: 1, 1, 32>}, {transform_indices = @transform_11, window_bounds = array<i64: 1, 1, 32>}, {transform_indices = @transform_12, window_bounds = array<i64: 1, 1, 32>}, {transform_indices = @transform_13, window_bounds = array<i64: 8, 32>}]} {
    %c0_i32 = arith.constant 0 : i32
    %0 = arith.cmpi eq, %arg1, %c0_i32 : i32
    %1 = arith.extui %0 : i1 to i32
    %c0_i32_0 = arith.constant 0 : i32
    %2 = arith.cmpi ne, %1, %c0_i32_0 : i32
    scf.if %2 {
      %c0_80 = arith.constant 0 : index
      %c0_81 = arith.constant 0 : index
      %185 = vector.load %arg2[%c0_80, %c0_81] : memref<8x32xf32, #tpu.memory_space<vmem>>, vector<8x32xf32>
      %c0_82 = arith.constant 0 : index
      %c0_83 = arith.constant 0 : index
      %186 = vector.load %arg16[%c0_82, %c0_83] : memref<8x32xf32, #tpu.memory_space<vmem>>, vector<8x32xf32>
      tpu.vector_store %arg16[%c0_82, %c0_83], %185 {strides = array<i32>} : memref<8x32xf32, #tpu.memory_space<vmem>>, vector<8x32xf32>,
    } else {
    }
    %c0 = arith.constant 0 : index
    %c0_1 = arith.constant 0 : index
    %3 = vector.load %arg16[%c0, %c0_1] : memref<8x32xf32, #tpu.memory_space<vmem>>, vector<8x32xf32>
    %c0_2 = arith.constant 0 : index
    %c0_3 = arith.constant 0 : index
    %c0_4 = arith.constant 0 : index
    %4 = vector.load %arg4[%c0_2, %c0_3, %c0_4] : memref<1x1x96xf32, #tpu.memory_space<vmem>>, vector<1x1x96xf32>
    %5 = vector.shape_cast %4 : vector<1x1x96xf32> to vector<1x96xf32>
    %c0_5 = arith.constant 0 : index
    %c0_6 = arith.constant 0 : index
    %c0_7 = arith.constant 0 : index
    %6 = vector.load %arg6[%c0_5, %c0_6, %c0_7] : memref<1x1x32xf32, #tpu.memory_space<vmem>>, vector<1x1x32xf32>
    %7 = vector.shape_cast %6 : vector<1x1x32xf32> to vector<1x32xf32>
    %c0_8 = arith.constant 0 : index
    %c0_9 = arith.constant 0 : index
    %c0_10 = arith.constant 0 : index
    %8 = vector.load %arg7[%c0_8, %c0_9, %c0_10] : memref<1x1x32xf32, #tpu.memory_space<vmem>>, vector<1x1x32xf32>
    %9 = vector.shape_cast %8 : vector<1x1x32xf32> to vector<1x32xf32>
    %c0_11 = arith.constant 0 : index
    %c0_12 = arith.constant 0 : index
    %c0_13 = arith.constant 0 : index
    %10 = vector.load %arg8[%c0_11, %c0_12, %c0_13] : memref<1x1x32xf32, #tpu.memory_space<vmem>>, vector<1x1x32xf32>
    %11 = vector.shape_cast %10 : vector<1x1x32xf32> to vector<1x32xf32>
    %c0_14 = arith.constant 0 : index
    %c0_15 = arith.constant 0 : index
    %c0_16 = arith.constant 0 : index
    %12 = vector.load %arg10[%c0_14, %c0_15, %c0_16] : memref<1x1x64xf32, #tpu.memory_space<vmem>>, vector<1x1x64xf32>
    %13 = vector.shape_cast %12 : vector<1x1x64xf32> to vector<1x64xf32>
    %c0_17 = arith.constant 0 : index
    %c0_18 = arith.constant 0 : index
    %c0_19 = arith.constant 0 : index
    %14 = vector.load %arg12[%c0_17, %c0_18, %c0_19] : memref<1x1x32xf32, #tpu.memory_space<vmem>>, vector<1x1x32xf32>
    %15 = vector.shape_cast %14 : vector<1x1x32xf32> to vector<1x32xf32>
    %c0_20 = arith.constant 0 : index
    %c0_21 = arith.constant 0 : index
    %c0_22 = arith.constant 0 : index
    %16 = vector.load %arg13[%c0_20, %c0_21, %c0_22] : memref<1x1x32xf32, #tpu.memory_space<vmem>>, vector<1x1x32xf32>
    %17 = vector.shape_cast %16 : vector<1x1x32xf32> to vector<1x32xf32>
    %c0_23 = arith.constant 0 : index
    %c0_24 = arith.constant 0 : index
    %c0_25 = arith.constant 0 : index
    %18 = vector.load %arg14[%c0_23, %c0_24, %c0_25] : memref<1x1x32xf32, #tpu.memory_space<vmem>>, vector<1x1x32xf32>
    %19 = vector.shape_cast %18 : vector<1x1x32xf32> to vector<1x32xf32>
    %c0_26 = arith.constant 0 : index
    %c0_27 = arith.constant 0 : index
    %c0_28 = arith.constant 0 : index
    %20 = vector.load %arg3[%c0_26, %c0_27, %c0_28] : memref<1x32x96xbf16, #tpu.memory_space<vmem>>, vector<1x32x96xbf16>
    %21 = vector.shape_cast %20 : vector<1x32x96xbf16> to vector<32x96xbf16>
    %c0_29 = arith.constant 0 : index
    %c0_30 = arith.constant 0 : index
    %c0_31 = arith.constant 0 : index
    %22 = vector.load %arg5[%c0_29, %c0_30, %c0_31] : memref<1x32x32xbf16, #tpu.memory_space<vmem>>, vector<1x32x32xbf16>
    %23 = vector.shape_cast %22 : vector<1x32x32xbf16> to vector<32x32xbf16>
    %c0_32 = arith.constant 0 : index
    %c0_33 = arith.constant 0 : index
    %c0_34 = arith.constant 0 : index
    %24 = vector.load %arg9[%c0_32, %c0_33, %c0_34] : memref<1x32x64xbf16, #tpu.memory_space<vmem>>, vector<1x32x64xbf16>
    %25 = vector.shape_cast %24 : vector<1x32x64xbf16> to vector<32x64xbf16>
    %c0_35 = arith.constant 0 : index
    %c0_36 = arith.constant 0 : index
    %c0_37 = arith.constant 0 : index
    %26 = vector.load %arg11[%c0_35, %c0_36, %c0_37] : memref<1x64x32xbf16, #tpu.memory_space<vmem>>, vector<1x64x32xbf16>
    %27 = vector.shape_cast %26 : vector<1x64x32xbf16> to vector<64x32xbf16>
    %28 = arith.truncf %3 : vector<8x32xf32> to vector<8x32xbf16>
    %cst = arith.constant dense<0.000000e+00> : vector<8x96xf32>
    %29 = tpu.matmul %28, %21, %cst {dimension_numbers = #tpu.dot_dimension_numbers<[1], [0], [0], [1], [0, 0, 1, 1], [], []>} : vector<8x32xbf16>, vector<32x96xbf16>, vector<8x96xf32> -> vector<8x96xf32>
    %30 = vector.broadcast %5 : vector<1x96xf32> to vector<8x96xf32>
    %31 = arith.addf %29, %30 : vector<8x96xf32>
    %32 = vector.extract_strided_slice %31 {offsets = [0, 0], sizes = [8, 32], strides = [1, 1]} : vector<8x96xf32> to vector<8x32xf32>
    %cst_38 = arith.constant 0.353553385 : f32
    %33 = vector.broadcast %cst_38 : f32 to vector<8x32xf32>
    %34 = arith.mulf %32, %33 : vector<8x32xf32>
    %35 = arith.truncf %34 : vector<8x32xf32> to vector<8x32xbf16>
    %36 = vector.extract_strided_slice %31 {offsets = [0, 32], sizes = [8, 32], strides = [1, 1]} : vector<8x96xf32> to vector<8x32xf32>
    %37 = arith.truncf %36 : vector<8x32xf32> to vector<8x32xbf16>
    %38 = vector.extract_strided_slice %31 {offsets = [0, 64], sizes = [8, 32], strides = [1, 1]} : vector<8x96xf32> to vector<8x32xf32>
    %39 = arith.truncf %38 : vector<8x32xf32> to vector<8x32xbf16>
    %cst_39 = arith.constant 0.000000e+00 : f32
    %40 = vector.broadcast %cst_39 : f32 to vector<8x32xf32>
    %41 = vector.extract_strided_slice %35 {offsets = [0, 0], sizes = [8, 8], strides = [1, 1]} : vector<8x32xbf16> to vector<8x8xbf16>
    %42 = vector.extract_strided_slice %37 {offsets = [0, 0], sizes = [8, 8], strides = [1, 1]} : vector<8x32xbf16> to vector<8x8xbf16>
    %43 = vector.extract_strided_slice %39 {offsets = [0, 0], sizes = [8, 8], strides = [1, 1]} : vector<8x32xbf16> to vector<8x8xbf16>
    %cst_40 = arith.constant dense<0.000000e+00> : vector<8x8xf32>
    %44 = tpu.matmul %41, %42, %cst_40 {dimension_numbers = #tpu.dot_dimension_numbers<[1], [1], [0], [0], [0, 0, 1, 0], [], []>} : vector<8x8xbf16>, vector<8x8xbf16>, vector<8x8xf32> -> vector<8x8xf32>
    %cst_41 = arith.constant dense<0xFF800000> : vector<8xf32>
    %45 = vector.multi_reduction <maximumf>, %44, %cst_41 [1] : vector<8x8xf32> to vector<8xf32>
    %46 = vector.shape_cast %45 : vector<8xf32> to vector<8x1xf32>
    %47 = vector.broadcast %46 : vector<8x1xf32> to vector<8x8xf32>
    %48 = arith.subf %44, %47 : vector<8x8xf32>
    %49 = math.exp %48 : vector<8x8xf32>
    %cst_42 = arith.constant dense<0.000000e+00> : vector<8xf32>
    %50 = vector.multi_reduction <add>, %49, %cst_42 [1] : vector<8x8xf32> to vector<8xf32>
    %51 = vector.shape_cast %50 : vector<8xf32> to vector<8x1xf32>
    %52 = tpu.reciprocal %51 {approx = true} : vector<8x1xf32> -> vector<8x1xf32>
    %53 = vector.broadcast %52 : vector<8x1xf32> to vector<8x8xf32>
    %54 = arith.mulf %49, %53 : vector<8x8xf32>
    %55 = arith.truncf %54 : vector<8x8xf32> to vector<8x8xbf16>
    %cst_43 = arith.constant dense<0.000000e+00> : vector<8x8xf32>
    %56 = tpu.matmul %55, %43, %cst_43 {dimension_numbers = #tpu.dot_dimension_numbers<[1], [0], [0], [1], [0, 0, 1, 1], [], []>} : vector<8x8xbf16>, vector<8x8xbf16>, vector<8x8xf32> -> vector<8x8xf32>
    %57 = arith.truncf %56 : vector<8x8xf32> to vector<8x8xbf16>
    %58 = vector.extract_strided_slice %23 {offsets = [0, 0], sizes = [8, 32], strides = [1, 1]} : vector<32x32xbf16> to vector<8x32xbf16>
    %cst_44 = arith.constant dense<0.000000e+00> : vector<8x32xf32>
    %59 = tpu.matmul %57, %58, %cst_44 {dimension_numbers = #tpu.dot_dimension_numbers<[1], [0], [0], [1], [0, 0, 1, 1], [], []>} : vector<8x8xbf16>, vector<8x32xbf16>, vector<8x32xf32> -> vector<8x32xf32>
    %60 = arith.addf %40, %59 : vector<8x32xf32>
    %61 = vector.extract_strided_slice %35 {offsets = [0, 8], sizes = [8, 8], strides = [1, 1]} : vector<8x32xbf16> to vector<8x8xbf16>
    %62 = vector.extract_strided_slice %37 {offsets = [0, 8], sizes = [8, 8], strides = [1, 1]} : vector<8x32xbf16> to vector<8x8xbf16>
    %63 = vector.extract_strided_slice %39 {offsets = [0, 8], sizes = [8, 8], strides = [1, 1]} : vector<8x32xbf16> to vector<8x8xbf16>
    %cst_45 = arith.constant dense<0.000000e+00> : vector<8x8xf32>
    %64 = tpu.matmul %61, %62, %cst_45 {dimension_numbers = #tpu.dot_dimension_numbers<[1], [1], [0], [0], [0, 0, 1, 0], [], []>} : vector<8x8xbf16>, vector<8x8xbf16>, vector<8x8xf32> -> vector<8x8xf32>
    %cst_46 = arith.constant dense<0xFF800000> : vector<8xf32>
    %65 = vector.multi_reduction <maximumf>, %64, %cst_46 [1] : vector<8x8xf32> to vector<8xf32>
    %66 = vector.shape_cast %65 : vector<8xf32> to vector<8x1xf32>
    %67 = vector.broadcast %66 : vector<8x1xf32> to vector<8x8xf32>
    %68 = arith.subf %64, %67 : vector<8x8xf32>
    %69 = math.exp %68 : vector<8x8xf32>
    %cst_47 = arith.constant dense<0.000000e+00> : vector<8xf32>
    %70 = vector.multi_reduction <add>, %69, %cst_47 [1] : vector<8x8xf32> to vector<8xf32>
    %71 = vector.shape_cast %70 : vector<8xf32> to vector<8x1xf32>
    %72 = tpu.reciprocal %71 {approx = true} : vector<8x1xf32> -> vector<8x1xf32>
    %73 = vector.broadcast %72 : vector<8x1xf32> to vector<8x8xf32>
    %74 = arith.mulf %69, %73 : vector<8x8xf32>
    %75 = arith.truncf %74 : vector<8x8xf32> to vector<8x8xbf16>
    %cst_48 = arith.constant dense<0.000000e+00> : vector<8x8xf32>
    %76 = tpu.matmul %75, %63, %cst_48 {dimension_numbers = #tpu.dot_dimension_numbers<[1], [0], [0], [1], [0, 0, 1, 1], [], []>} : vector<8x8xbf16>, vector<8x8xbf16>, vector<8x8xf32> -> vector<8x8xf32>
    %77 = arith.truncf %76 : vector<8x8xf32> to vector<8x8xbf16>
    %78 = vector.extract_strided_slice %23 {offsets = [8, 0], sizes = [8, 32], strides = [1, 1]} : vector<32x32xbf16> to vector<8x32xbf16>
    %cst_49 = arith.constant dense<0.000000e+00> : vector<8x32xf32>
    %79 = tpu.matmul %77, %78, %cst_49 {dimension_numbers = #tpu.dot_dimension_numbers<[1], [0], [0], [1], [0, 0, 1, 1], [], []>} : vector<8x8xbf16>, vector<8x32xbf16>, vector<8x32xf32> -> vector<8x32xf32>
    %80 = arith.addf %60, %79 : vector<8x32xf32>
    %81 = vector.extract_strided_slice %35 {offsets = [0, 16], sizes = [8, 8], strides = [1, 1]} : vector<8x32xbf16> to vector<8x8xbf16>
    %82 = vector.extract_strided_slice %37 {offsets = [0, 16], sizes = [8, 8], strides = [1, 1]} : vector<8x32xbf16> to vector<8x8xbf16>
    %83 = vector.extract_strided_slice %39 {offsets = [0, 16], sizes = [8, 8], strides = [1, 1]} : vector<8x32xbf16> to vector<8x8xbf16>
    %cst_50 = arith.constant dense<0.000000e+00> : vector<8x8xf32>
    %84 = tpu.matmul %81, %82, %cst_50 {dimension_numbers = #tpu.dot_dimension_numbers<[1], [1], [0], [0], [0, 0, 1, 0], [], []>} : vector<8x8xbf16>, vector<8x8xbf16>, vector<8x8xf32> -> vector<8x8xf32>
    %cst_51 = arith.constant dense<0xFF800000> : vector<8xf32>
    %85 = vector.multi_reduction <maximumf>, %84, %cst_51 [1] : vector<8x8xf32> to vector<8xf32>
    %86 = vector.shape_cast %85 : vector<8xf32> to vector<8x1xf32>
    %87 = vector.broadcast %86 : vector<8x1xf32> to vector<8x8xf32>
    %88 = arith.subf %84, %87 : vector<8x8xf32>
    %89 = math.exp %88 : vector<8x8xf32>
    %cst_52 = arith.constant dense<0.000000e+00> : vector<8xf32>
    %90 = vector.multi_reduction <add>, %89, %cst_52 [1] : vector<8x8xf32> to vector<8xf32>
    %91 = vector.shape_cast %90 : vector<8xf32> to vector<8x1xf32>
    %92 = tpu.reciprocal %91 {approx = true} : vector<8x1xf32> -> vector<8x1xf32>
    %93 = vector.broadcast %92 : vector<8x1xf32> to vector<8x8xf32>
    %94 = arith.mulf %89, %93 : vector<8x8xf32>
    %95 = arith.truncf %94 : vector<8x8xf32> to vector<8x8xbf16>
    %cst_53 = arith.constant dense<0.000000e+00> : vector<8x8xf32>
    %96 = tpu.matmul %95, %83, %cst_53 {dimension_numbers = #tpu.dot_dimension_numbers<[1], [0], [0], [1], [0, 0, 1, 1], [], []>} : vector<8x8xbf16>, vector<8x8xbf16>, vector<8x8xf32> -> vector<8x8xf32>
    %97 = arith.truncf %96 : vector<8x8xf32> to vector<8x8xbf16>
    %98 = vector.extract_strided_slice %23 {offsets = [16, 0], sizes = [8, 32], strides = [1, 1]} : vector<32x32xbf16> to vector<8x32xbf16>
    %cst_54 = arith.constant dense<0.000000e+00> : vector<8x32xf32>
    %99 = tpu.matmul %97, %98, %cst_54 {dimension_numbers = #tpu.dot_dimension_numbers<[1], [0], [0], [1], [0, 0, 1, 1], [], []>} : vector<8x8xbf16>, vector<8x32xbf16>, vector<8x32xf32> -> vector<8x32xf32>
    %100 = arith.addf %80, %99 : vector<8x32xf32>
    %101 = vector.extract_strided_slice %35 {offsets = [0, 24], sizes = [8, 8], strides = [1, 1]} : vector<8x32xbf16> to vector<8x8xbf16>
    %102 = vector.extract_strided_slice %37 {offsets = [0, 24], sizes = [8, 8], strides = [1, 1]} : vector<8x32xbf16> to vector<8x8xbf16>
    %103 = vector.extract_strided_slice %39 {offsets = [0, 24], sizes = [8, 8], strides = [1, 1]} : vector<8x32xbf16> to vector<8x8xbf16>
    %cst_55 = arith.constant dense<0.000000e+00> : vector<8x8xf32>
    %104 = tpu.matmul %101, %102, %cst_55 {dimension_numbers = #tpu.dot_dimension_numbers<[1], [1], [0], [0], [0, 0, 1, 0], [], []>} : vector<8x8xbf16>, vector<8x8xbf16>, vector<8x8xf32> -> vector<8x8xf32>
    %cst_56 = arith.constant dense<0xFF800000> : vector<8xf32>
    %105 = vector.multi_reduction <maximumf>, %104, %cst_56 [1] : vector<8x8xf32> to vector<8xf32>
    %106 = vector.shape_cast %105 : vector<8xf32> to vector<8x1xf32>
    %107 = vector.broadcast %106 : vector<8x1xf32> to vector<8x8xf32>
    %108 = arith.subf %104, %107 : vector<8x8xf32>
    %109 = math.exp %108 : vector<8x8xf32>
    %cst_57 = arith.constant dense<0.000000e+00> : vector<8xf32>
    %110 = vector.multi_reduction <add>, %109, %cst_57 [1] : vector<8x8xf32> to vector<8xf32>
    %111 = vector.shape_cast %110 : vector<8xf32> to vector<8x1xf32>
    %112 = tpu.reciprocal %111 {approx = true} : vector<8x1xf32> -> vector<8x1xf32>
    %113 = vector.broadcast %112 : vector<8x1xf32> to vector<8x8xf32>
    %114 = arith.mulf %109, %113 : vector<8x8xf32>
    %115 = arith.truncf %114 : vector<8x8xf32> to vector<8x8xbf16>
    %cst_58 = arith.constant dense<0.000000e+00> : vector<8x8xf32>
    %116 = tpu.matmul %115, %103, %cst_58 {dimension_numbers = #tpu.dot_dimension_numbers<[1], [0], [0], [1], [0, 0, 1, 1], [], []>} : vector<8x8xbf16>, vector<8x8xbf16>, vector<8x8xf32> -> vector<8x8xf32>
    %117 = arith.truncf %116 : vector<8x8xf32> to vector<8x8xbf16>
    %118 = vector.extract_strided_slice %23 {offsets = [24, 0], sizes = [8, 32], strides = [1, 1]} : vector<32x32xbf16> to vector<8x32xbf16>
    %cst_59 = arith.constant dense<0.000000e+00> : vector<8x32xf32>
    %119 = tpu.matmul %117, %118, %cst_59 {dimension_numbers = #tpu.dot_dimension_numbers<[1], [0], [0], [1], [0, 0, 1, 1], [], []>} : vector<8x8xbf16>, vector<8x32xbf16>, vector<8x32xf32> -> vector<8x32xf32>
    %120 = arith.addf %100, %119 : vector<8x32xf32>
    %c0_60 = arith.constant 0 : index
    %c0_61 = arith.constant 0 : index
    %121 = vector.load %arg17[%c0_60, %c0_61] : memref<8x32xf32, #tpu.memory_space<vmem>>, vector<8x32xf32>
    tpu.vector_store %arg17[%c0_60, %c0_61], %120 {strides = array<i32>} : memref<8x32xf32, #tpu.memory_space<vmem>>, vector<8x32xf32>,
    %c0_62 = arith.constant 0 : index
    %c0_63 = arith.constant 0 : index
    %122 = vector.load %arg17[%c0_62, %c0_63] : memref<8x32xf32, #tpu.memory_space<vmem>>, vector<8x32xf32>
    %123 = vector.broadcast %7 : vector<1x32xf32> to vector<8x32xf32>
    %124 = arith.addf %122, %123 : vector<8x32xf32>
    %125 = arith.addf %3, %124 : vector<8x32xf32>
    %cst_64 = arith.constant dense<0.000000e+00> : vector<8xf32>
    %126 = vector.multi_reduction <add>, %125, %cst_64 [1] : vector<8x32xf32> to vector<8xf32>
    %127 = vector.shape_cast %126 : vector<8xf32> to vector<8x1xf32>
    %cst_65 = arith.constant 3.200000e+01 : f32
    %128 = vector.broadcast %cst_65 : f32 to vector<8x1xf32>
    %129 = arith.divf %127, %128 : vector<8x1xf32>
    %130 = vector.broadcast %129 : vector<8x1xf32> to vector<8x32xf32>
    %131 = arith.subf %125, %130 : vector<8x32xf32>
    %132 = arith.mulf %131, %131 : vector<8x32xf32>
    %cst_66 = arith.constant dense<0.000000e+00> : vector<8xf32>
    %133 = vector.multi_reduction <add>, %132, %cst_66 [1] : vector<8x32xf32> to vector<8xf32>
    %134 = vector.shape_cast %133 : vector<8xf32> to vector<8x1xf32>
    %cst_67 = arith.constant 3.200000e+01 : f32
    %135 = vector.broadcast %cst_67 : f32 to vector<8x1xf32>
    %136 = arith.divf %134, %135 : vector<8x1xf32>
    %137 = vector.broadcast %129 : vector<8x1xf32> to vector<8x32xf32>
    %138 = arith.subf %125, %137 : vector<8x32xf32>
    %cst_68 = arith.constant 9.99999974E-6 : f32
    %139 = vector.broadcast %cst_68 : f32 to vector<8x1xf32>
    %140 = arith.addf %136, %139 : vector<8x1xf32>
    %141 = math.rsqrt %140 : vector<8x1xf32>
    %142 = vector.broadcast %141 : vector<8x1xf32> to vector<8x32xf32>
    %143 = arith.mulf %138, %142 : vector<8x32xf32>
    %144 = vector.broadcast %9 : vector<1x32xf32> to vector<8x32xf32>
    %145 = arith.mulf %143, %144 : vector<8x32xf32>
    %146 = vector.broadcast %11 : vector<1x32xf32> to vector<8x32xf32>
    %147 = arith.addf %145, %146 : vector<8x32xf32>
    %148 = arith.truncf %147 : vector<8x32xf32> to vector<8x32xbf16>
    %cst_69 = arith.constant dense<0.000000e+00> : vector<8x64xf32>
    %149 = tpu.matmul %148, %25, %cst_69 {dimension_numbers = #tpu.dot_dimension_numbers<[1], [0], [0], [1], [0, 0, 1, 1], [], []>} : vector<8x32xbf16>, vector<32x64xbf16>, vector<8x64xf32> -> vector<8x64xf32>
    %150 = vector.broadcast %13 : vector<1x64xf32> to vector<8x64xf32>
    %151 = arith.addf %149, %150 : vector<8x64xf32>
    %152 = arith.truncf %151 : vector<8x64xf32> to vector<8x64xbf16>
    %cst_70 = arith.constant dense<0.000000e+00> : vector<8x32xf32>
    %153 = tpu.matmul %152, %27, %cst_70 {dimension_numbers = #tpu.dot_dimension_numbers<[1], [0], [0], [1], [0, 0, 1, 1], [], []>} : vector<8x64xbf16>, vector<64x32xbf16>, vector<8x32xf32> -> vector<8x32xf32>
    %154 = vector.broadcast %15 : vector<1x32xf32> to vector<8x32xf32>
    %155 = arith.addf %153, %154 : vector<8x32xf32>
    %cst_71 = arith.constant 0.000000e+00 : f32
    %156 = vector.broadcast %cst_71 : f32 to vector<8x32xf32>
    %157 = arith.maximumf %155, %156 : vector<8x32xf32>
    %158 = arith.addf %147, %157 : vector<8x32xf32>
    %cst_72 = arith.constant dense<0.000000e+00> : vector<8xf32>
    %159 = vector.multi_reduction <add>, %158, %cst_72 [1] : vector<8x32xf32> to vector<8xf32>
    %160 = vector.shape_cast %159 : vector<8xf32> to vector<8x1xf32>
    %cst_73 = arith.constant 3.200000e+01 : f32
    %161 = vector.broadcast %cst_73 : f32 to vector<8x1xf32>
    %162 = arith.divf %160, %161 : vector<8x1xf32>
    %163 = vector.broadcast %162 : vector<8x1xf32> to vector<8x32xf32>
    %164 = arith.subf %158, %163 : vector<8x32xf32>
    %165 = arith.mulf %164, %164 : vector<8x32xf32>
    %cst_74 = arith.constant dense<0.000000e+00> : vector<8xf32>
    %166 = vector.multi_reduction <add>, %165, %cst_74 [1] : vector<8x32xf32> to vector<8xf32>
    %167 = vector.shape_cast %166 : vector<8xf32> to vector<8x1xf32>
    %cst_75 = arith.constant 3.200000e+01 : f32
    %168 = vector.broadcast %cst_75 : f32 to vector<8x1xf32>
    %169 = arith.divf %167, %168 : vector<8x1xf32>
    %170 = vector.broadcast %162 : vector<8x1xf32> to vector<8x32xf32>
    %171 = arith.subf %158, %170 : vector<8x32xf32>
    %cst_76 = arith.constant 9.99999974E-6 : f32
    %172 = vector.broadcast %cst_76 : f32 to vector<8x1xf32>
    %173 = arith.addf %169, %172 : vector<8x1xf32>
    %174 = math.rsqrt %173 : vector<8x1xf32>
    %175 = vector.broadcast %174 : vector<8x1xf32> to vector<8x32xf32>
    %176 = arith.mulf %171, %175 : vector<8x32xf32>
    %177 = vector.broadcast %17 : vector<1x32xf32> to vector<8x32xf32>
    %178 = arith.mulf %176, %177 : vector<8x32xf32>
    %179 = vector.broadcast %19 : vector<1x32xf32> to vector<8x32xf32>
    %180 = arith.addf %178, %179 : vector<8x32xf32>
    %c0_77 = arith.constant 0 : index
    %c0_78 = arith.constant 0 : index
    %181 = vector.load %arg16[%c0_77, %c0_78] : memref<8x32xf32, #tpu.memory_space<vmem>>, vector<8x32xf32>
    tpu.vector_store %arg16[%c0_77, %c0_78], %180 {strides = array<i32>} : memref<8x32xf32, #tpu.memory_space<vmem>>, vector<8x32xf32>,
    %c1_i32 = arith.constant 1 : i32
    %182 = arith.cmpi eq, %arg1, %c1_i32 : i32
    %183 = arith.extui %182 : i1 to i32
    %c0_i32_79 = arith.constant 0 : i32
    %184 = arith.cmpi ne, %183, %c0_i32_79 : i32
    scf.if %184 {
      %c0_80 = arith.constant 0 : index
      %c0_81 = arith.constant 0 : index
      %185 = vector.load %arg15[%c0_80, %c0_81] : memref<8x32xf32, #tpu.memory_space<vmem>>, vector<8x32xf32>
      tpu.vector_store %arg15[%c0_80, %c0_81], %180 {strides = array<i32>} : memref<8x32xf32, #tpu.memory_space<vmem>>, vector<8x32xf32>,
    } else {
    }
    return
  }
  func.func @transform_0(%arg0: i32, %arg1: i32) -> (i32, i32) {
    %c0_i32 = arith.constant 0 : i32
    %c0_i32_0 = arith.constant 0 : i32
    return %arg0, %c0_i32 : i32, i32
  }
  func.func @transform_1(%arg0: i32, %arg1: i32) -> (i32, i32, i32) {
    %c0_i32 = arith.constant 0 : i32
    %c0_i32_0 = arith.constant 0 : i32
    %c0_i32_1 = arith.constant 0 : i32
    return %arg1, %c0_i32, %c0_i32_0 : i32, i32, i32
  }
  func.func @transform_2(%arg0: i32, %arg1: i32) -> (i32, i32, i32) {
    %c0_i32 = arith.constant 0 : i32
    %c0_i32_0 = arith.constant 0 : i32
    %c0_i32_1 = arith.constant 0 : i32
    return %arg1, %c0_i32, %c0_i32_0 : i32, i32, i32
  }
  func.func @transform_3(%arg0: i32, %arg1: i32) -> (i32, i32, i32) {
    %c0_i32 = arith.constant 0 : i32
    %c0_i32_0 = arith.constant 0 : i32
    %c0_i32_1 = arith.constant 0 : i32
    return %arg1, %c0_i32, %c0_i32_0 : i32, i32, i32
  }
  func.func @transform_4(%arg0: i32, %arg1: i32) -> (i32, i32, i32) {
    %c0_i32 = arith.constant 0 : i32
    %c0_i32_0 = arith.constant 0 : i32
    %c0_i32_1 = arith.constant 0 : i32
    return %arg1, %c0_i32, %c0_i32_0 : i32, i32, i32
  }
  func.func @transform_5(%arg0: i32, %arg1: i32) -> (i32, i32, i32) {
    %c0_i32 = arith.constant 0 : i32
    %c0_i32_0 = arith.constant 0 : i32
    %c0_i32_1 = arith.constant 0 : i32
    return %arg1, %c0_i32, %c0_i32_0 : i32, i32, i32
  }
  func.func @transform_6(%arg0: i32, %arg1: i32) -> (i32, i32, i32) {
    %c0_i32 = arith.constant 0 : i32
    %c0_i32_0 = arith.constant 0 : i32
    %c0_i32_1 = arith.constant 0 : i32
    return %arg1, %c0_i32, %c0_i32_0 : i32, i32, i32
  }
  func.func @transform_7(%arg0: i32, %arg1: i32) -> (i32, i32, i32) {
    %c0_i32 = arith.constant 0 : i32
    %c0_i32_0 = arith.constant 0 : i32
    %c0_i32_1 = arith.constant 0 : i32
    return %arg1, %c0_i32, %c0_i32_0 : i32, i32, i32
  }
  func.func @transform_8(%arg0: i32, %arg1: i32) -> (i32, i32, i32) {
    %c0_i32 = arith.constant 0 : i32
    %c0_i32_0 = arith.constant 0 : i32
    %c0_i32_1 = arith.constant 0 : i32
    return %arg1, %c0_i32, %c0_i32_0 : i32, i32, i32
  }
  func.func @transform_9(%arg0: i32, %arg1: i32) -> (i32, i32, i32) {
    %c0_i32 = arith.constant 0 : i32
    %c0_i32_0 = arith.constant 0 : i32
    %c0_i32_1 = arith.constant 0 : i32
    return %arg1, %c0_i32, %c0_i32_0 : i32, i32, i32
  }
  func.func @transform_10(%arg0: i32, %arg1: i32) -> (i32, i32, i32) {
    %c0_i32 = arith.constant 0 : i32
    %c0_i32_0 = arith.constant 0 : i32
    %c0_i32_1 = arith.constant 0 : i32
    return %arg1, %c0_i32, %c0_i32_0 : i32, i32, i32
  }
  func.func @transform_11(%arg0: i32, %arg1: i32) -> (i32, i32, i32) {
    %c0_i32 = arith.constant 0 : i32
    %c0_i32_0 = arith.constant 0 : i32
    %c0_i32_1 = arith.constant 0 : i32
    return %arg1, %c0_i32, %c0_i32_0 : i32, i32, i32
  }
  func.func @transform_12(%arg0: i32, %arg1: i32) -> (i32, i32, i32) {
    %c0_i32 = arith.constant 0 : i32
    %c0_i32_0 = arith.constant 0 : i32
    %c0_i32_1 = arith.constant 0 : i32
    return %arg1, %c0_i32, %c0_i32_0 : i32, i32, i32
  }
  func.func @transform_13(%arg0: i32, %arg1: i32) -> (i32, i32) {
    %c0_i32 = arith.constant 0 : i32
    %c0_i32_0 = arith.constant 0 : i32
    return %arg0, %c0_i32 : i32, i32
  }
}

</mosaic_0001>

<bundles_post_ra>
// kernel: tpu_custom_call.1
= control target key start
LH: loop header
LB: loop body
LE: loop exit
PB: predicated region body
PF: predicated region fallthrough
CT: control target
= control target key end

     0   :  { %s2722_s0 = inlined_call_operand.hbm [shape: f32[16,32], index: 0, kind: input, shape index: {}]   ;;  %s2723_s1 = inlined_call_operand.vmem [shape: bf16[2,32,96], index: 1, kind: input, shape index: {}]   ;;  %s2724_s2 = inlined_call_operand.vmem [shape: f32[2,1,96], index: 2, kind: input, shape index: {}]   ;;  %s2725_s3 = inlined_call_operand.vmem [shape: bf16[2,32,32], index: 3, kind: input, shape index: {}]   ;;  %s2726_s4 = inlined_call_operand.vmem [shape: f32[2,1,32], index: 4, kind: input, shape index: {}]   ;;  %s2727_s5 = inlined_call_operand.vmem [shape: f32[2,1,32], index: 5, kind: input, shape index: {}]   ;;  %s2728_s6 = inlined_call_operand.vmem [shape: f32[2,1,32], index: 6, kind: input, shape index: {}]   ;;  %s2729_s7 = inlined_call_operand.vmem [shape: bf16[2,32,64], index: 7, kind: input, shape index: {}]   ;;  %s2730_s8 = inlined_call_operand.vmem [shape: f32[2,1,64], index: 8, kind: input, shape index: {}]   ;;  %s2731_s9 = inlined_call_operand.vmem [shape: bf16[2,64,32], index: 9, kind: input, shape index: {}]   ;;  %s2732_s10 = inlined_call_operand.vmem [shape: f32[2,1,32], index: 10, kind: input, shape index: {}]   ;;  %s2733_s11 = inlined_call_operand.vmem [shape: f32[2,1,32], index: 11, kind: input, shape index: {}]   ;;  %s2734_s12 = inlined_call_operand.vmem [shape: f32[2,1,32], index: 12, kind: input, shape index: {}]   ;;  %s2735_s13 = inlined_call_operand.hbm [shape: f32[16,32], index: 13, kind: output, shape index: {}]  }
   0x1   :  { %2749 = sst [smem:[#allocation23_spill]] %s2722_s0 }
   0x2   :  { %2750 = sst [smem:[#allocation24_spill]] %s2723_s1 }
   0x3   :  { %2751 = sst [smem:[#allocation25_spill]] %s2725_s3 }
   0x4   :  { %2752 = sst [smem:[#allocation26_spill]] %s2728_s6 }
   0x5   :  { %2753 = sst [smem:[#allocation27_spill]] %s2729_s7 }
   0x6   :  { %2754 = sst [smem:[#allocation28_spill]] %s2732_s10 }
   0x7   :  { %2755 = sst [smem:[#allocation29_spill]] %s2733_s11 }
   0x8   :  { %2756 = sst [smem:[#allocation30_spill]] %s2734_s12 }
   0x9   :  { %2757 = sst [smem:[#allocation31_spill]] %s2735_s13 }
   0xa   :  { %18 = vsyncpa [#allocation5], 0 }
   0xb   :  { %20 = vsyncpa [#allocation5 + $0x1], 0 }
   0xc   :  { %21 = vsyncpa [#allocation6], 0 }
   0xd   :  { %23 = vsyncpa [#allocation6 + $0x1], 0  ;;  %s2343_s25 = smov 0   ;;  %s2345_s26 = smov 0  }
   0xe   :  { %s2347_s27 = smov 0   ;;  %s2349_s28 = smov 0  }
   0xf   :  { %s2351_s29 = smov 0   ;;  %s2353_s30 = smov 0  }
  0x10   :  { %s2355_s14 = smov 0   ;;  %s2357_s15 = smov 0  }
  0x11 LB: > { %2758 = sst [smem:[#allocation10_spill]] %s2228_s25  ;;  %s1820_s16 = sadd.s32 4294967295, %s2256_s15   ;;  %s2256_s15 = sphi %s2357_s15, %s29_s15   ;;  %s2252_s14 = sphi %s2355_s14, %s2806_s14   ;;  %s2248_s30 = sphi %s2353_s30, %s2805_s30   ;;  %s2244_s29 = sphi %s2351_s29, %s2804_s29   ;;  %s2240_s28 = sphi %s2349_s28, %s2803_s28   ;;  %s2236_s27 = sphi %s2347_s27, %s2802_s27   ;;  %s2232_s26 = sphi %s2345_s26, %s2801_s26   ;;  %s2228_s25 = sphi %s2343_s25, %s2800_s25  }
  0x12   : > { %2759 = sst [smem:[#allocation11_spill]] %s2232_s26  ;;  %s1821_s17 = sadd.s32 4294967294, %s2256_s15  }
  0x13   : > { %2760 = sst [smem:[#allocation12_spill]] %s2236_s27  ;;  %s38_s18 = sadd.s32 1, %s2248_s30 }
  0x14   : > { %2761 = sst [smem:[#allocation13_spill]] %s2244_s29  ;;  %s41_s19 = sadd.s32 1, %s2252_s14 }
  0x15   : > { %2762 = sst [smem:[#allocation14_spill]] %s2248_s30  ;;  %p39_p0 = scmp.ge.s32.totalorder %s38_s18, 2 }
  0x16   : > { %2763 = sst [smem:[#allocation15_spill]] %s2252_s14  ;;  %s48_s20 = sadd.s32 1, %s2236_s27 }
  0x17   : > { %2764 = sst [smem:[#allocation16_spill]] %s2256_s15  ;;  %p55_p1 = scmp.ne.s32.totalorder %s2236_s27, %s2232_s26 }
  0x18   : > { %p56_p2 = scmp.eq.s32.totalorder %s2256_s15, 0  ;;  %s2808_s18 = smov (%p39_p0, %s38_s18), 0 }
  0x19   : > { %2765 = sst [smem:[#allocation17_spill]] %s2808_s18  ;;  %s2810_s19 = smov (!%p39_p0, %s41_s19), %s2252_s14 }
  0x1a   : > { %p2394_p3 = por %p56_p2, %p55_p1  ;;  %p61_p4 = scmp.ne.s32.totalorder %s2232_s26, %s2228_s25 }
  0x1b   : > { %p43_p5 = scmp.ge.s32.totalorder %s2810_s19, 2  ;;  %p62_p6 = scmp.eq.s32.totalorder %s1820_s16, 0 }
  0x1c   : > { %p397_p7 = scmp.eq.s32.totalorder %s1820_s16, 3  ;;  %p403_p8 = scmp.eq.s32.totalorder %s1821_s17, 3 }
  0x1d   : > { %s2812_s19 = smov (%p43_p5, %s2810_s19), 0  ;;  %p2402_p9 = por %p62_p6, %p61_p4 }
  0x1e   : > { %2767 = sst [smem:[#allocation18_spill]] %s2812_s19  ;;  %p2406_p10 = por %p397_p7, %p55_p1 }
  0x1f   : > { %s45_s24 = ssub.s32 %s2252_s14, %s2812_s19  ;;  %p2412_p11 = por %p403_p8, %p61_p4 }
  0x20   : > { %s2769_s23 = scalar_select %p2406_p10, 1, 0 }
  0x21   : > { %s2771_s18 = scalar_select %p2412_p11, 1, 0 }
  0x22   : > { %2770 = sst [smem:[#allocation19_spill]] %s2769_s23  ;;  %p46_p12 = scmp.eq.s32.totalorder %s45_s24, 0 }
  0x23   : > { %2772 = sst [smem:[#allocation20_spill]] %s2771_s18  ;;  %p2025_p13 = scmp.lt.s32.totalorder %s2256_s15, 4 }
  0x24   : > { %s423_s16 = sand.u32 1, %s2236_s27   ;;  %s1825_s25 = sshll.u32 %s2252_s14, 7 }
  0x25   : > { %s2419_s17 = scalar_select %p46_p12, %s2236_s27, %s48_s20  }
  0x26   : > { %s1824_s30 = sshll.u32 %s423_s16, 3  ;;  %s2774_s0 = sld [smem:[#allocation23_spill]] }
  0x27   : > { %2773 = sst [smem:[#allocation21_spill]] %s2419_s17  ;;  %s427_s11 = scalar_lea.vmem [#allocation4], %s1824_s30 }
  0x28   : > { %s434_s10 = sshll.u32 %s427_s11, 4  ;;  %p2427_p0 = pnand %p2025_p13, %p2394_p3  ;;  %s435_s10 = int_to_ptr.vmem [resolvable:$true] %s434_s10 }
  0x29   : > { %p1826_p1 = scmp.ge.s32.totalorder %s2256_s15, 1  ;;  %p519_p2 = scmp.lt.s32.totalorder %s2256_s15, 5 }
  0x2a   : > { %s424_s24 = scalar_lea.sflag [#allocation5], %s423_s16  ;;  %p2134_p4 = pneg %p2427_p0 }
  0x2b   : > { %s2145_s20 = scalar_lea.vmem %s435_s10, 128  ;;  %s2258_s13 = smov [#allocation4]  }
  0x2c   : > { %s432_s12 = scalar_lea.hbm %s2774_s0, %s1825_s25  ;;  %p2146_p5 = scmp.ne.s32.totalorder %s435_s10, %s2145_s20 }
  0x2d   : > { %s2150_s25 = sshll.u32 %s2258_s13, 4  ;;  %s2151_s25 = int_to_ptr.vmem [resolvable:$false] %s2150_s25 }
  0x2e   : > { %p2148_p6 = pnand %p2146_p5, %p2134_p4  ;;  %s2152_s11 = scalar_lea.vmem %s2151_s25, 256 }
  0x2f   : > { %p2153_p8 = scmp.lt.s32.totalorder %s435_s10, %s2151_s25  ;;  %p2154_p12 = scmp.lt.s32.totalorder %s2152_s11, %s2145_s20 }
  0x30   : > { %p2149_p7 = pneg %p2148_p6 }
  0x31   : > { %p2155_p3 = por %p2154_p12, %p2153_p8 }
  0x33   : > { %p2156_p13 = pnand %p2155_p3, %p2149_p7 }
  0x35   : > { %2159 = shalt.err (!%p2156_p13)
}
  0x36   : > { %2020 = dma.hbm_to_vmem [thread:$0]  (!%p2427_p0), %s432_s12, 128, %s435_s10, %s424_s24  }
  0x37   : > { %p520_p11 = pnand %p1826_p1, %p519_p2 }
  0x39   : > { %523 = sbr.rel (%p520_p11) target bundleno = 3596 (0xe0c), region = 72 }
  0x3e   : > { %s2442_s29 = sand.u32 1, %s2232_s26  }
  0x3f   : > { %2776 = sst [smem:[#allocation22_spill]] %s2442_s29  ;;  %s1827_s30 = sshll.u32 %s2442_s29, 3 }
  0x40   : > { %s526_s21 = scalar_lea.sflag [#allocation5], %s2442_s29  ;;  %s529_s16 = scalar_lea.vmem [#allocation4], %s1827_s30 }
  0x41   : > { %2219 = dma.done.wait (%p2402_p9), %s526_s21, 128  }
  0x42   : > { %2221 = vsyncadd (%p2402_p9), %s526_s21, 4294967168  ;;  %p616_p0 = scmp.lt.s32.totalorder %s2240_s28, 1  ;;  %s2777_s1 = sld [smem:[#allocation24_spill]] }
  0x43   : > { %s2778_s3 = sld [smem:[#allocation25_spill]]  ;;  %s2506_s11 = scalar_lea.vmem [#allocation7], %s1827_s30 }
  0x44   : > { %s2452_s10 = scalar_select %p616_p0, %s2240_s28, 1 }
  0x45   : > { %s2780_s7 = sld [smem:[#allocation27_spill]]  ;;  %p1837_p9 = scmp.ne.s32.totalorder %s2240_s28, 0 }
  0x46   : > { %s1874_s12 = sshll.u32 %s2452_s10, 4  ;;  %s2781_s15 = sld [smem:[#allocation28_spill]] }
  0x47   : > { %s2782_s29 = sld [smem:[#allocation29_spill]] }
  0x48   : > { %s620_s25 = scalar_lea.vmem %s2777_s1, %s1874_s12  ;;  %s645_s1 = scalar_lea.vmem %s2730_s8, %s2452_s10 }
  0x49   : > { %s2465_s0 = scalar_lea.vmem %s2778_s3, %s1874_s12  ;;  %s1877_s3 = sshll.u32 %s2452_s10, 5 }
  0x4a   : > { %s2492_s27 = scalar_lea.vmem %s2731_s9, %s1877_s3 }
  0x4b   : > { %s2482_s13 = scalar_lea.vmem %s2780_s7, %s1874_s12  ;;  %s2783_s7 = sld [smem:[#allocation30_spill]] }
  0x4c   : > { %s653_s23 = scalar_lea.vmem %s2781_s15, %s2452_s10 }
  0x4d   : > { %s656_s22 = scalar_lea.vmem %s2782_s29, %s2452_s10  ;;  %664 = sbr.rel (%p1837_p9) target bundleno = 84 (0x54), region = 80 }
  0x51   : > { %s659_s6 = scalar_lea.vmem %s2783_s7, %s2452_s10 }
  0x52   : > { %v665_v0 = vld [vmem:[%s529_s16] sm:$0xff]  ;;  %vm666_vm0 = vcmask 261120  }
  0x53   : > { %667 = vst.msk [vmem:[#allocation2] sm:$0xff] %vm666_vm0, %v665_v0 }
  0x54 PF: > { %v2104_v1 = vld [vmem:[%s620_s25 + $0x8] sm:$0xff]   ;;  %v2259_v2 = vmov 0.0   ;;  %v2105_v3 = vld [vmem:[%s620_s25] sm:$0xff]   ;;  %vm2260_vm1 = vmmov 0   ;;  %vm716_vm2 = vcmask 261120   ;;  %s2784_s15 = scalar_lea.vmem %s2724_s2, %s2452_s10  ;;  %s2261_s29 = smov 96  }
  0x55   : > { %1913 = vmatprep.subr.bf16.mxu1 %v2259_v2  ;;  %1927 = vmatprep.subr.bf16.mxu0 %v2259_v2  ;;  %v1838_v6 = vld [vmem:[%s2784_s15] ss:$0 sm:$0xff]  ;;  %s2262_s30 = smov 120   ;;  %s2263_s16 = smov 88   ;;  %vm766_vm3 = vcmask 64512   ;;  %vm830_vm4 = vcmask 1043456  }
  0x56   : > { %1914 = vmatpush3.bf16.msra.mxu1 %v2104_v1  ;;  %1917 = vmatprep.mubr.msk.bf16.mxu1 %vm2260_vm1, %v2259_v2  ;;  %s2264_s25 = smov 64   ;;  %s2265_s24 = smov 56   ;;  %v681_v52 = vld [vmem:[%s2465_s0] sm:$0xf]  ;;  %v682_v54 = vld [vmem:[%s2465_s0 + $0x4] sm:$0xf] }
  0x57   : > { %1915 = vmatprep.subr.bf16.mxu1 %v2259_v2  ;;  %1929 = vmatprep.mubr.msk.bf16.mxu0 %vm2260_vm1, %v2259_v2  ;;  %s2266_s21 = smov 112   ;;  %s2267_s14 = smov 80   ;;  %v1037_v53 = vsel %vm830_vm4, %v681_v52, 0  ;;  %v991_v55 = vsel %vm830_vm4, %v682_v54, 0  ;;  %vm1526_vm5 = vcmask 523264  }
  0x58   : > { %s2268_s17 = smov 72   ;;  %s2269_s26 = smov 104  }
  0x59   : > { %s2270_s18 = smov 48   ;;  %s2271_s19 = smov 40  }
  0x5a   : > { %v2513_v4 = vld [vmem:[#allocation2] sm:$0xff]  ;;  %1916 = vmatpush3.bf16.msra.mxu1 %v2105_v3  ;;  %s2785_s20 = scalar_lea.vmem %s2726_s4, %s2452_s10  ;;  %s2786_s7 = scalar_lea.vmem %s2727_s5, %s2452_s10 }
  0x5b   : > { %v697_v5 = vpack.c.bf16 %v2513_v4, %v2513_v4  ;;  %1921 = vmatprep.subr.bf16.mxu1 %v2259_v2  ;;  %p1869_p11 = scmp.ne.s32.totalorder %s2240_s28, 1 }
  0x5d   : > { %1918 = vmatmul.mubr.msk.bf16.vlgmr.msra.gmra.mxu1 %vm716_vm2, %v697_v5 }
  0x5e   : > { %1923 = vmatprep.mubr.msk.bf16.mxu1 %vm2260_vm1, %v2259_v2 }
 0x11d   : > { %v754_v7 = vpop.f32.mrf.mxu1 }
 0x11e   : > { %v755_v8 = vadd.f32 %v1838_v6, %v754_v7 }
 0x11f   : > { %v1919_v9 = vpop.f32.mrf.mxu1 }
 0x120   : > { %v760_v10 = vmul.f32 0.35355338, %v755_v8  ;;  %v2529_v11 = vpack.c.bf16 %v755_v8, %v755_v8 }
 0x121   : > { %v757_v12 = vpop.f32.mrf.mxu1 }
 0x122   : > { %v2531_v13 = vpack.c.bf16 %v760_v10, %v760_v10  ;;  %764 = vrot.lane.b32.xlu0 %v2529_v11, %s2261_s29 }
 0x123   : > { %v1920_v14 = vpop.f32.mrf.mxu1 }
 0x124   : > { %876 = vrot.lane.b32.xlu1 %v2531_v13, %s2262_s30  ;;  %s2787_s30 = sld [smem:[#allocation26_spill]] }
 0x126   : > { %878 = vrot.lane.b32.xlu0 %v2529_v11, %s2263_s16 }
 0x12a   : > { %s2788_s16 = scalar_lea.vmem %s2787_s30, %s2452_s10 }
 0x194   : > { %v765_v15 = vpop.permute.xlu0 %764 }
 0x195   : > { %v771_v16 = vsel %vm766_vm3, %v765_v15, 0 }
 0x196   : > { %1922 = vmatpush3.bf16.xpose.msra.mxu1 %v771_v16  ;;  %v877_v19 = vpop.permute.xlu1 %876 }
 0x197   : > { %1933 = vmatprep.subr.bf16.mxu1 %v2259_v2 }
 0x198   : > { %v879_v17 = vpop.permute.xlu0 %878 }
 0x199   : > { %v884_v18 = vsel %vm766_vm3, %v879_v17, 0 }
 0x19d   : > { %1924 = vmatmul.mubr.msk.bf16.vlgmr.msra.gmra.mxu1 %vm766_vm3, %v2531_v13 }
 0x19e   : > { %1934 = vmatpush3.bf16.xpose.msra.mxu1 %v884_v18  ;;  %1935 = vmatprep.mubr.msk.bf16.mxu1 %vm2260_vm1, %v2259_v2 }
 0x19f   : > { %1945 = vmatprep.subr.bf16.mxu1 %v2259_v2 }
 0x1a5   : > { %1936 = vmatmul.mubr.msk.bf16.vlgmr.msra.gmra.mxu1 %vm766_vm3, %v877_v19 }
 0x1a6   : > { %1947 = vmatprep.mubr.msk.bf16.mxu1 %vm2260_vm1, %v2259_v2  ;;  %1946 = vmatpush3.bf16.msra.mxu1 %v991_v55 }
 0x1a7   : > { %1957 = vmatprep.subr.bf16.mxu1 %v2259_v2 }
 0x25d   : > { %v807_v20 = vpop.f32.mrf.mxu1 }
 0x25e   : > { %v813_v21 = vsel %vm766_vm3, %v807_v20, -inf }
 0x25f   : > { %814 = vmax.xlane.f32.xlu1 %v813_v21  ;;  %v1925_v22 = vpop.f32.mrf.mxu1 }
 0x261   : > { %v810_v23 = vpop.f32.mrf.mxu1 }
 0x263   : > { %v1926_v24 = vpop.f32.mrf.mxu1 }
 0x265   : > { %v920_v25 = vpop.f32.mrf.mxu1 }
 0x266   : > { %v926_v26 = vsel %vm766_vm3, %v920_v25, -inf }
 0x267   : > { %927 = vmax.xlane.f32.xlu0 %v926_v26  ;;  %v1937_v27 = vpop.f32.mrf.mxu1 }
 0x269   : > { %v923_v28 = vpop.f32.mrf.mxu1 }
 0x26b   : > { %v1938_v29 = vpop.f32.mrf.mxu1 }
 0x2e8   : > { %v815_v30 = vpop.xlane.xlu1 %814 }
 0x2e9   : > { %v816_v31 = vsub.f32 %v807_v20, %v815_v30 }
 0x2eb   : > { %v817_v32 = vmul.f32 1.442695, %v816_v31 }
 0x2ed   : > { %2112 = vpow2.f32 %v817_v32 }
 0x2f0   : > { %v928_v33 = vpop.xlane.xlu0 %927 }
 0x2f1   : > { %v929_v34 = vsub.f32 %v920_v25, %v928_v33 }
 0x2f3   : > { %v930_v35 = vmul.f32 1.442695, %v929_v34 }
 0x2f5   : > { %2114 = vpow2.f32 %v930_v35 }
 0x2fa   : > { %v2113_v36 = vpop.eup %2112 }
 0x2fb   : > { %v819_v37 = vsel %vm766_vm3, %v2113_v36, 0.0 }
 0x2fc   : > { %820 = vadd.xlane.f32.xlu0 %v819_v37 }
 0x302   : > { %v2115_v38 = vpop.eup %2114 }
 0x303   : > { %v932_v39 = vsel %vm766_vm3, %v2115_v38, 0.0 }
 0x304   : > { %933 = vadd.xlane.f32.xlu1 %v932_v39 }
 0x312   : > { %825 = vrot.lane.b32.xlu0 %v2529_v11, %s2264_s25 }
 0x315   : > { %938 = vrot.lane.b32.xlu1 %v2529_v11, %s2265_s24 }
 0x316   : > { %1079 = vrot.lane.b32.xlu0 %v2531_v13, %s2266_s21 }
 0x319   : > { %1081 = vrot.lane.b32.xlu1 %v2529_v11, %s2267_s14 }
 0x385   : > { %v821_v40 = vpop.xlane.xlu0 %820 }
 0x386   : > { %2116 = vrcp.f32 %v821_v40 }
 0x389   : > { %v826_v41 = vpop.permute.xlu0 %825 }
 0x38a   : > { %v832_v42 = vsel %vm830_vm4, %v826_v41, 0 }
 0x38b   : > { %1928 = vmatpush3.bf16.msra.mxu0 %v832_v42 }
 0x38c   : > { %1939 = vmatprep.subr.bf16.mxu0 %v2259_v2 }
 0x38d   : > { %v934_v43 = vpop.xlane.xlu1 %933  ;;  %v1080_v6 = vpop.permute.xlu0 %1079 }
 0x38e   : > { %2118 = vrcp.f32 %v934_v43 }
 0x391   : > { %v939_v46 = vpop.permute.xlu1 %938 }
 0x392   : > { %v944_v48 = vsel %vm830_vm4, %v939_v46, 0 }
 0x393   : > { %v2117_v44 = vpop.eup %2116 }
 0x394   : > { %v823_v45 = vmul.f32 %v2117_v44, %v2113_v36  ;;  %v683_v36 = vld [vmem:[%s2465_s0 + $0x8] sm:$0xf] }
 0x395   : > { %v1082_v61 = vpop.permute.xlu1 %1081  ;;  %v1194_v37 = vsel %vm830_vm4, %v683_v36, 0 }
 0x396   : > { %v824_v47 = vpack.c.bf16 %v823_v45, %v823_v45  ;;  %v1087_v1 = vsel %vm766_vm3, %v1082_v61, 0 }
 0x398   : > { %1930 = vmatmul.mubr.msk.bf16.vlgmr.msra.gmra.mxu0 %vm766_vm3, %v824_v47 }
 0x399   : > { %1940 = vmatpush3.bf16.msra.mxu0 %v944_v48  ;;  %1941 = vmatprep.mubr.msk.bf16.mxu0 %vm2260_vm1, %v2259_v2 }
 0x39a   : > { %1951 = vmatprep.subr.bf16.mxu0 %v2259_v2 }
 0x39b   : > { %v2119_v49 = vpop.eup %2118 }
 0x39c   : > { %v936_v50 = vmul.f32 %v2119_v49, %v2115_v38 }
 0x39e   : > { %v937_v51 = vpack.c.bf16 %v936_v50, %v936_v50 }
 0x3a0   : > { %1942 = vmatmul.mubr.msk.bf16.vlgmr.msra.gmra.mxu0 %vm766_vm3, %v937_v51 }
 0x3a1   : > { %1953 = vmatprep.mubr.msk.bf16.mxu0 %vm2260_vm1, %v2259_v2  ;;  %1952 = vmatpush3.bf16.msra.mxu0 %v1037_v53 }
 0x3a2   : > { %1963 = vmatprep.subr.bf16.mxu0 %v2259_v2 }
 0x458   : > { %v868_v56 = vpop.f32.mrf.mxu0 }
 0x459   : > { %v874_v57 = vpack.c.bf16 %v868_v56, %v868_v56  ;;  %v684_v56 = vld [vmem:[%s2465_s0 + $0xc] sm:$0xf] }
 0x45a   : > { %v1931_v58 = vpop.f32.mrf.mxu0 }
 0x45b   : > { %1954 = vmatmul.mubr.msk.bf16.vlgmr.msra.gmra.mxu0 %vm766_vm3, %v874_v57 }
 0x45c   : > { %v871_v59 = vpop.f32.mrf.mxu0  ;;  %1965 = vmatprep.mubr.msk.bf16.mxu0 %vm2260_vm1, %v2259_v2 }
 0x45e   : > { %v1932_v60 = vpop.f32.mrf.mxu0 }
 0x460   : > { %v980_v62 = vpop.f32.mrf.mxu0 }
 0x461   : > { %v986_v63 = vpack.c.bf16 %v980_v62, %v980_v62 }
 0x462   : > { %v1943_v0 = vpop.f32.mrf.mxu0 }
 0x463   : > { %1948 = vmatmul.mubr.msk.bf16.vlgmr.msra.gmra.mxu1 %vm766_vm3, %v986_v63 }
 0x464   : > { %1958 = vmatpush3.bf16.xpose.msra.mxu1 %v1087_v1  ;;  %v983_v3 = vpop.f32.mrf.mxu0  ;;  %1959 = vmatprep.mubr.msk.bf16.mxu1 %vm2260_vm1, %v2259_v2 }
 0x465   : > { %1969 = vmatprep.subr.bf16.mxu1 %v2259_v2 }
 0x466   : > { %v1944_v5 = vpop.f32.mrf.mxu0 }
 0x46b   : > { %1960 = vmatmul.mubr.msk.bf16.vlgmr.msra.gmra.mxu1 %vm766_vm3, %v1080_v6 }
 0x46c   : > { %1971 = vmatprep.mubr.msk.bf16.mxu1 %vm2260_vm1, %v2259_v2  ;;  %1970 = vmatpush3.bf16.msra.mxu1 %v1194_v37  ;;  %v2111_v37 = vld [vmem:[%s2492_s27] sm:$0xff]  }
 0x46d   : > { %1981 = vmatprep.subr.bf16.mxu1 %v2259_v2 }
 0x51b   : > { %v1073_v7 = vpop.f32.mrf.mxu0 }
 0x51d   : > { %v1955_v8 = vpop.f32.mrf.mxu0 }
 0x51f   : > { %v1076_v9 = vpop.f32.mrf.mxu0 }
 0x521   : > { %v1956_v10 = vpop.f32.mrf.mxu0 }
 0x523   : > { %v1027_v12 = vpop.f32.mrf.mxu1 }
 0x524   : > { %v2582_v14 = vadd.f32 %v1073_v7, %v1027_v12 }
 0x525   : > { %v1949_v15 = vpop.f32.mrf.mxu1 }
 0x526   : > { %v1854_v15 = vld [vmem:[%s2785_s20] ss:$0 sm:$0xff] }
 0x527   : > { %v1030_v16 = vpop.f32.mrf.mxu1 }
 0x529   : > { %v1950_v17 = vpop.f32.mrf.mxu1 }
 0x52b   : > { %v1123_v18 = vpop.f32.mrf.mxu1 }
 0x52c   : > { %v1129_v19 = vsel %vm766_vm3, %v1123_v18, -inf }
 0x52d   : > { %1130 = vmax.xlane.f32.xlu1 %v1129_v19  ;;  %v1961_v20 = vpop.f32.mrf.mxu1 }
 0x52f   : > { %v1126_v21 = vpop.f32.mrf.mxu1 }
 0x531   : > { %v1962_v22 = vpop.f32.mrf.mxu1 }
 0x53e   : > { %1239 = vrot.lane.b32.xlu1 %v2529_v11, %s2268_s17 }
 0x542   : > { %1237 = vrot.lane.b32.xlu1 %v2531_v13, %s2269_s26 }
 0x5b6   : > { %v1131_v23 = vpop.xlane.xlu1 %1130 }
 0x5b7   : > { %v1132_v24 = vsub.f32 %v1123_v18, %v1131_v23 }
 0x5b9   : > { %v1133_v25 = vmul.f32 1.442695, %v1132_v24 }
 0x5ba   : > { %v1240_v32 = vpop.permute.xlu1 %1239 }
 0x5bb   : > { %2120 = vpow2.f32 %v1133_v25  ;;  %v1245_v34 = vsel %vm766_vm3, %v1240_v32, 0  ;;  %v2106_v25 = vld [vmem:[%s2482_s13 + $0x8] sm:$0xff]   ;;  %v1855_v32 = vld [vmem:[%s2786_s7] ss:$0 sm:$0xff] }
 0x5be   : > { %v1238_v35 = vpop.permute.xlu1 %1237 }
 0x5c8   : > { %v2121_v26 = vpop.eup %2120 }
 0x5c9   : > { %v1135_v27 = vsel %vm766_vm3, %v2121_v26, 0.0 }
 0x5ca   : > { %1136 = vadd.xlane.f32.xlu0 %v1135_v27  ;;  %v2109_v27 = vld [vmem:[%s2492_s27 + $0x10] sm:$0xff]  }
 0x5e0   : > { %1141 = vrot.lane.b32.xlu0 %v2529_v11, %s2270_s18 }
 0x653   : > { %v1137_v28 = vpop.xlane.xlu0 %1136 }
 0x654   : > { %2122 = vrcp.f32 %v1137_v28  ;;  %v2110_v28 = vld [vmem:[%s2492_s27 + $0x8] sm:$0xff]  }
 0x657   : > { %v1142_v29 = vpop.permute.xlu0 %1141 }
 0x658   : > { %v1147_v30 = vsel %vm830_vm4, %v1142_v29, 0 }
 0x659   : > { %1964 = vmatpush3.bf16.msra.mxu0 %v1147_v30 }
 0x65a   : > { %1975 = vmatprep.subr.bf16.mxu0 %v2259_v2 }
 0x661   : > { %v2123_v13 = vpop.eup %2122 }
 0x662   : > { %v1139_v31 = vmul.f32 %v2123_v13, %v2121_v26  ;;  %v2107_v26 = vld [vmem:[%s2482_s13] sm:$0xff]  }
 0x664   : > { %v1140_v33 = vpack.c.bf16 %v1139_v31, %v1139_v31 }
 0x666   : > { %1966 = vmatmul.mubr.msk.bf16.vlgmr.msra.gmra.mxu0 %vm766_vm3, %v1140_v33 }
 0x667   : > { %1976 = vmatpush3.bf16.xpose.msra.mxu0 %v1245_v34  ;;  %1977 = vmatprep.mubr.msk.bf16.mxu0 %vm2260_vm1, %v2259_v2  ;;  %v1856_v34 = vld [vmem:[%s2788_s16] ss:$0 sm:$0xff] }
 0x668   : > { %1987 = vmatprep.subr.bf16.mxu0 %v2259_v2 }
 0x66e   : > { %1978 = vmatmul.mubr.msk.bf16.vlgmr.msra.gmra.mxu0 %vm766_vm3, %v1238_v35 }
 0x66f   : > { %1989 = vmatprep.mubr.msk.bf16.mxu0 %vm2260_vm1, %v2259_v2 }
 0x726   : > { %v1183_v38 = vpop.f32.mrf.mxu0 }
 0x727   : > { %v1189_v39 = vpack.c.bf16 %v1183_v38, %v1183_v38  ;;  %v1857_v38 = vld [vmem:[%s645_s1] ss:$0 sm:$0xff] }
 0x728   : > { %v1967_v40 = vpop.f32.mrf.mxu0 }
 0x729   : > { %1972 = vmatmul.mubr.msk.bf16.vlgmr.msra.gmra.mxu1 %vm766_vm3, %v1189_v39 }
 0x72a   : > { %v1186_v41 = vpop.f32.mrf.mxu0  ;;  %1983 = vmatprep.mubr.msk.bf16.mxu1 %vm2260_vm1, %v2259_v2 }
 0x72c   : > { %v1968_v42 = vpop.f32.mrf.mxu0 }
 0x72e   : > { %v1281_v43 = vpop.f32.mrf.mxu0 }
 0x72f   : > { %v1287_v44 = vsel %vm766_vm3, %v1281_v43, -inf }
 0x730   : > { %1288 = vmax.xlane.f32.xlu0 %v1287_v44  ;;  %v1979_v45 = vpop.f32.mrf.mxu0 }
 0x731   : > { %v1861_v45 = vld [vmem:[%s653_s23] ss:$0 sm:$0xff] }
 0x732   : > { %v1284_v46 = vpop.f32.mrf.mxu0 }
 0x734   : > { %v1980_v47 = vpop.f32.mrf.mxu0 }
 0x746   : > { %1299 = vrot.lane.b32.xlu0 %v2529_v11, %s2271_s19  ;;  %v1352_v11 = vsel %vm830_vm4, %v684_v56, 0 }
 0x747   : > { %1988 = vmatpush3.bf16.msra.mxu0 %v1352_v11 }
 0x748   : > { %2001 = vmatprep.subr.bf16.mxu0 %v2259_v2 }
 0x7b9   : > { %v1289_v48 = vpop.xlane.xlu0 %1288 }
 0x7ba   : > { %v1290_v49 = vsub.f32 %v1281_v43, %v1289_v48 }
 0x7bc   : > { %v1291_v50 = vmul.f32 1.442695, %v1290_v49 }
 0x7bd   : > { %v1300_v51 = vpop.permute.xlu0 %1299 }
 0x7be   : > { %2124 = vpow2.f32 %v1291_v50  ;;  %v1305_v52 = vsel %vm830_vm4, %v1300_v51, 0 }
 0x7bf   : > { %1982 = vmatpush3.bf16.msra.mxu1 %v1305_v52 }
 0x7c0   : > { %1993 = vmatprep.subr.bf16.mxu1 %v2259_v2 }
 0x7cb   : > { %v2125_v53 = vpop.eup %2124 }
 0x7cc   : > { %v1293_v54 = vsel %vm766_vm3, %v2125_v53, 0.0 }
 0x7cd   : > { %1294 = vadd.xlane.f32.xlu1 %v1293_v54 }
 0x7e9   : > { %v1230_v55 = vpop.f32.mrf.mxu1 }
 0x7ea   : > { %v1236_v57 = vadd.f32 %v1230_v55, %v2582_v14 }
 0x7eb   : > { %v1973_v58 = vpop.f32.mrf.mxu1 }
 0x7ed   : > { %v1233_v59 = vpop.f32.mrf.mxu1 }
 0x7ef   : > { %v1974_v60 = vpop.f32.mrf.mxu1 }
 0x856   : > { %v1295_v61 = vpop.xlane.xlu1 %1294 }
 0x857   : > { %2126 = vrcp.f32 %v1295_v61 }
 0x864   : > { %v2127_v62 = vpop.eup %2126 }
 0x865   : > { %v1297_v63 = vmul.f32 %v2127_v62, %v2125_v53  ;;  %v1867_v62 = vld [vmem:[%s656_s22] ss:$0 sm:$0xff] }
 0x867   : > { %v1298_v0 = vpack.c.bf16 %v1297_v63, %v1297_v63 }
 0x869   : > { %1984 = vmatmul.mubr.msk.bf16.vlgmr.msra.gmra.mxu1 %vm766_vm3, %v1298_v0  ;;  %v1868_v0 = vld [vmem:[%s659_s6] ss:$0 sm:$0xff] }
 0x86a   : > { %1997 = vmatprep.mubr.msk.bf16.mxu1 %vm2260_vm1, %v2259_v2  ;;  %1994 = vmatpush3.bf16.msra.mxu1 %v2106_v25 }
 0x86b   : > { %1995 = vmatprep.subr.bf16.mxu1 %v2259_v2 }
 0x86e   : > { %1996 = vmatpush3.bf16.msra.mxu1 %v2107_v26 }
 0x929   : > { %v1341_v1 = vpop.f32.mrf.mxu1 }
 0x92a   : > { %v1347_v3 = vpack.c.bf16 %v1341_v1, %v1341_v1 }
 0x92b   : > { %v1985_v5 = vpop.f32.mrf.mxu1 }
 0x92c   : > { %1990 = vmatmul.mubr.msk.bf16.vlgmr.msra.gmra.mxu0 %vm766_vm3, %v1347_v3 }
 0x92d   : > { %v1344_v6 = vpop.f32.mrf.mxu1  ;;  %2009 = vmatprep.mubr.msk.bf16.mxu0 %vm2260_vm1, %v2259_v2 }
 0x92f   : > { %v1986_v7 = vpop.f32.mrf.mxu1 }
 0x9ec   : > { %v1388_v8 = vpop.f32.mrf.mxu0 }
 0x9ed   : > { %v1394_v9 = vadd.f32 %v1388_v8, %v1236_v57 }
 0x9ee   : > { %v1991_v10 = vpop.f32.mrf.mxu0 }
 0x9ef   : > { %1395 = vst.msk [vmem:[#allocation3] sm:$0xff] %vm716_vm2, %v1394_v9 }
 0x9f0   : > { %v1391_v12 = vpop.f32.mrf.mxu0 }
 0x9f2   : > { %v1992_v14 = vpop.f32.mrf.mxu0 }
 0x9f6   : > { %v1396_v16 = vld [vmem:[#allocation3] sm:$0xff] }
 0x9f7   : > { %v1403_v17 = vadd.f32 %v1854_v15, %v1396_v16 }
 0x9f9   : > { %v1404_v18 = vadd.f32 %v1403_v17, %v2513_v4  ;;  %v2108_v4 = vld [vmem:[%s2492_s27 + $0x18] sm:$0xff]  }
 0x9fa   : > { %2002 = vmatpush3.bf16.msra.mxu0 %v2108_v4 }
 0x9fb   : > { %v1405_v19 = vsel %vm716_vm2, %v1404_v18, 0.0  ;;  %2003 = vmatprep.subr.bf16.mxu0 %v2259_v2 }
 0x9fc   : > { %1406 = vadd.xlane.f32.xlu1 %v1405_v19 }
 0x9fe   : > { %2004 = vmatpush3.bf16.msra.mxu0 %v2109_v27 }
 0x9ff   : > { %2005 = vmatprep.subr.bf16.mxu0 %v2259_v2 }
 0xa02   : > { %2006 = vmatpush3.bf16.msra.mxu0 %v2110_v28 }
 0xa03   : > { %2007 = vmatprep.subr.bf16.mxu0 %v2259_v2 }
 0xa06   : > { %2008 = vmatpush3.bf16.msra.mxu0 %v2111_v37 }
 0xa85   : > { %v1407_v20 = vpop.xlane.xlu1 %1406 }
 0xa86   : > { %v1409_v21 = vmul.f32 0.03125, %v1407_v20 }
 0xa88   : > { %v1410_v22 = vsub.f32 %v1404_v18, %v1409_v21 }
 0xa8a   : > { %v1411_v23 = vmul.f32 %v1410_v22, %v1410_v22 }
 0xa8c   : > { %v1412_v24 = vsel %vm716_vm2, %v1411_v23, 0.0 }
 0xa8d   : > { %1413 = vadd.xlane.f32.xlu1 %v1412_v24 }
 0xb16   : > { %v1414_v29 = vpop.xlane.xlu1 %1413 }
 0xb17   : > { %v1415_v30 = vmul.f32 0.03125, %v1414_v29 }
 0xb19   : > { %v1416_v13 = vadd.f32 1e-05, %v1415_v30 }
 0xb1b   : > { %2128 = vrsqrt.f32 %v1416_v13 }
 0xb28   : > { %v2129_v31 = vpop.eup %2128 }
 0xb29   : > { %v1418_v33 = vmul.f32 %v2129_v31, %v1410_v22 }
 0xb2b   : > { %v1425_v35 = vmul.f32 %v1855_v32, %v1418_v33 }
 0xb2d   : > { %v1432_v36 = vadd.f32 %v1856_v34, %v1425_v35 }
 0xb2f   : > { %v1433_v2 = vpack.c.bf16 %v1432_v36, %v1432_v36 }
 0xb31   : > { %1998 = vmatmul.mubr.msk.bf16.vlgmr.msra.gmra.mxu1 %vm716_vm2, %v1433_v2 }
 0xbf1   : > { %v1489_v39 = vpop.f32.mrf.mxu1 }
 0xbf2   : > { %v1490_v40 = vadd.f32 %v1857_v38, %v1489_v39 }
 0xbf3   : > { %v1999_v41 = vpop.f32.mrf.mxu1 }
 0xbf4   : > { %v1495_v42 = vpack.c.bf16 %v1490_v40, %v1490_v40 }
 0xbf5   : > { %v1492_v43 = vpop.f32.mrf.mxu1 }
 0xbf6   : > { %2010 = vmatmul.mubr.msk.bf16.vlgmr.msra.gmra.mxu0 %vm1526_vm5, %v1495_v42 }
 0xbf7   : > { %v2000_v44 = vpop.f32.mrf.mxu1 }
 0xcb6   : > { %v1564_v46 = vpop.f32.mrf.mxu0 }
 0xcb7   : > { %v1565_v47 = vadd.f32 %v1861_v45, %v1564_v46 }
 0xcb8   : > { %v2011_v48 = vpop.f32.mrf.mxu0 }
 0xcb9   : > { %v1570_v49 = vmax.f32 %v1565_v47, 0.0 }
 0xcba   : > { %v1567_v50 = vpop.f32.mrf.mxu0 }
 0xcbb   : > { %v1571_v51 = vadd.f32 %v1570_v49, %v1432_v36 }
 0xcbc   : > { %v2012_v52 = vpop.f32.mrf.mxu0 }
 0xcbd   : > { %v1572_v53 = vsel %vm716_vm2, %v1571_v51, 0.0 }
 0xcbe   : > { %1573 = vadd.xlane.f32.xlu1 %v1572_v53 }
 0xd47   : > { %v1574_v54 = vpop.xlane.xlu1 %1573 }
 0xd48   : > { %v1575_v55 = vmul.f32 0.03125, %v1574_v54 }
 0xd4a   : > { %v1576_v56 = vsub.f32 %v1571_v51, %v1575_v55 }
 0xd4c   : > { %v1577_v57 = vmul.f32 %v1576_v56, %v1576_v56 }
 0xd4e   : > { %v1578_v11 = vsel %vm716_vm2, %v1577_v57, 0.0 }
 0xd4f   : > { %1579 = vadd.xlane.f32.xlu1 %v1578_v11 }
 0xdd8   : > { %v1580_v58 = vpop.xlane.xlu1 %1579 }
 0xdd9   : > { %v1581_v59 = vmul.f32 0.03125, %v1580_v58 }
 0xddb   : > { %v1582_v60 = vadd.f32 1e-05, %v1581_v59 }
 0xddd   : > { %2130 = vrsqrt.f32 %v1582_v60 }
 0xdea   : > { %v2131_v61 = vpop.eup %2130 }
 0xdeb   : > { %v1584_v63 = vmul.f32 %v2131_v61, %v1576_v56 }
 0xded   : > { %v1591_v1 = vmul.f32 %v1867_v62, %v1584_v63  ;;  %1603 = sbr.rel (%p1869_p11) target bundleno = 3571 (0xdf3), region = 84 }
 0xdef   : > { %v1598_v3 = vadd.f32 %v1868_v0, %v1591_v1 }
 0xdf1   : > { %1599 = vst.msk [vmem:[#allocation2] sm:$0xff] %vm716_vm2, %v1598_v3 }
 0xdf2   : > { %1604 = vst.msk [vmem:[%s2506_s11] sm:$0xff] %vm716_vm2, %v1598_v3 }
 0xdf3 PF: > { %s2792_s0 = sld [smem:[#allocation13_spill]]  ;;  %s1619_s7 = sshll.u32 %s2506_s11, 4  ;;  %s1620_s7 = int_to_ptr.vmem [resolvable:$true] %s1619_s7 }
 0xdf4   : > { %s2793_s22 = sld [smem:[#allocation22_spill]]  ;;  %s2160_s29 = scalar_lea.vmem %s1620_s7, 128 }
 0xdf5   : > { %s2795_s10 = sld [smem:[#allocation31_spill]]  ;;  %p2161_p1 = scmp.ne.s32.totalorder %s1620_s7, %s2160_s29 }
 0xdf6   : > { %s2272_s28 = smov [#allocation7]  }
 0xdf7   : > { %p2162_p2 = pnand %p2161_p1, %p2406_p10  ;;  %s2164_s30 = sshll.u32 %s2272_s28, 4  ;;  %s2165_s30 = int_to_ptr.vmem [resolvable:$false] %s2164_s30 }
 0xdf8   : > { %s2166_s16 = scalar_lea.vmem %s2165_s30, 256  ;;  %p2167_p5 = scmp.lt.s32.totalorder %s1620_s7, %s2165_s30 }
 0xdf9   : > { %s1871_s20 = sshll.u32 %s2792_s0, 7  ;;  %p2163_p4 = pneg %p2162_p2 }
 0xdfa   : > { %s1606_s15 = scalar_lea.sflag [#allocation6], %s2793_s22  ;;  %p2168_p6 = scmp.lt.s32.totalorder %s2166_s16, %s2160_s29 }
 0xdfb   : > { %s1617_s6 = scalar_lea.hbm %s2795_s10, %s1871_s20 }
 0xdfc   : > { %p2169_p7 = por %p2168_p6, %p2167_p5 }
 0xdfe   : > { %p2170_p8 = pnand %p2169_p7, %p2163_p4 }
 0xe00   : > { %2173 = shalt.err (!%p2170_p8)
}
 0xe01   : > { %s2174_s25 = scalar_lea.hbm %s1617_s6, 128  ;;  %s2178_s21 = scalar_lea.hbm %s2795_s10, 256 }
 0xe02   : > { %p2175_p12 = scmp.ne.s32.totalorder %s1617_s6, %s2174_s25  ;;  %p2179_p0 = scmp.lt.s32.totalorder %s1617_s6, %s2795_s10 }
 0xe03   : > { %p2180_p9 = scmp.lt.s32.totalorder %s2178_s21, %s2174_s25 }
 0xe04   : > { %p2176_p3 = pnand %p2175_p12, %p2406_p10 }
 0xe05   : > { %p2181_p11 = por %p2180_p9, %p2179_p0 }
 0xe06   : > { %p2177_p13 = pneg %p2176_p3 }
 0xe08   : > { %p2182_p1 = pnand %p2181_p11, %p2177_p13 }
 0xe0a   : > { %2185 = shalt.err (!%p2182_p1)
}
 0xe0b   : > { %2015 = dma.vmem_to_hbm [thread:$0]  (%p2406_p10), %s1620_s7, 128, %s1617_s6, %s1606_s15  }
 0xe0c PF: > { %s2796_s1 = sld [smem:[#allocation16_spill]] }
 0xe0d   : > { %s2797_s27 = sld [smem:[#allocation10_spill]] }
 0xe0e   : > { %s2798_s23 = sld [smem:[#allocation20_spill]] }
 0xe12   : > { %p2026_p2 = scmp.ge.s32.totalorder %s2796_s1, 2 }
 0xe13   : > { %s1631_s26 = sand.u32 1, %s2797_s27  }
 0xe14   : > { %p2799_p4 = scmp.ne.s32.totalorder %s2798_s23, 0  ;;  %s1632_s18 = scalar_lea.sflag [#allocation6], %s1631_s26 }
 0xe16   : > { %p2022_p5 = pnand %p2026_p2, %p2799_p4 }
 0xe18   : > { %p2023_p6 = pneg %p2022_p5 }
 0xe1a   : > { %2223 = dma.done.wait (%p2023_p6), %s1632_s18, 128  }
 0xe1b   : > { %2225 = vsyncadd (%p2023_p6), %s1632_s18, 4294967168  ;;  %s29_s15 = sadd.s32 1, %s2796_s1   ;;  %s2800_s25 = sld [smem:[#allocation11_spill]] }
 0xe1c   : > { %p26_p7 = scmp.ge.s32.totalorder %s29_s15, 6   ;;  %s2801_s26 = sld [smem:[#allocation12_spill]] }
 0xe1d   : > { %s2802_s27 = sld [smem:[#allocation21_spill]] }
 0xe1e   : > { %s2803_s28 = sld [smem:[#allocation14_spill]]  ;;  %28 = sbr.rel (!%p26_p7) target bundleno = 17 (0x11), region = 161 }
 0xe1f   : > { %s2804_s29 = sld [smem:[#allocation15_spill]] }
 0xe20   : > { %s2805_s30 = sld [smem:[#allocation17_spill]] }
 0xe21   : > { %s2806_s14 = sld [smem:[#allocation18_spill]] }
 0xe23   :  { %1637 = vsyncpa [#allocation5], 1 }
 0xe24   :  { %1639 = vsyncpa [#allocation5 + $0x1], 1 }
 0xe25   :  { %1640 = vsyncpa [#allocation6], 1 }
 0xe26   :  { %1642 = vsyncpa [#allocation6 + $0x1], 1 }

</bundles_post_ra>
